<compile_context>
chip_gen: v7x
topology: tpu7x:2x2x1
jax: 0.10.0
libtpu: 0.0.40
codegen_flags: <defaults>
</compile_context>

<pallas_src>
import functools

import jax
import jax.numpy as jnp
from jax import lax
from jax.experimental import pallas as pl
from jax.experimental.pallas import tpu as pltpu


def _pair(v):
    if isinstance(v, (tuple, list)):
        return int(v[0]), int(v[1])
    return int(v), int(v)


def _rnd(v, m):
    return ((v + m - 1) // m) * m


def _vmem_capacity_bytes():
    """Physical VMEM per TensorCore; conservative fallback if query fails."""
    try:
        return int(pltpu.get_tpu_info().vmem_capacity_bytes)
    except Exception:
        return 64 * 1024 * 1024  # v7x worst case


def _need_bytes(ct, H, W, Ho, Wo, itemsize):
    """Per-grid-step VMEM high-water estimate (lane/sublane padding included)."""
    Wl, Wol = _rnd(W, 128), _rnd(Wo, 128)
    H8, Ho8 = _rnd(H, 8), _rnd(Ho, 8)
    in_blk = 2 * ct * H8 * Wl * itemsize        # double-buffered input block
    out_blk = 2 * ct * Ho8 * Wol * itemsize     # double-buffered output block
    x_f32 = ct * H8 * Wl * 4                    # f32-promoted input copy
    aw_b = ct * _rnd(W, 8) * Wol * 4            # broadcast W-pool matrix (Ct,W,Wo)
    ah_b = ct * Ho8 * _rnd(H, 128) * 4          # broadcast H-pool matrix (Ct,Ho,H)
    rs = ct * H8 * Wol * 4                      # (Ct, H, Wo) intermediate
    out_f32 = ct * Ho8 * Wol * 4                # f32 result before downcast
    return in_blk + out_blk + x_f32 + aw_b + ah_b + rs + out_f32


def _choose_c_tile(C, H, W, Ho, Wo, itemsize, budget):
    """Largest divisor of C whose per-step working set fits the VMEM budget."""
    for ct in sorted((d for d in range(1, C + 1) if C % d == 0), reverse=True):
        if _need_bytes(ct, H, W, Ho, Wo, itemsize) <= budget:
            return ct
    return 1  # TODO(synk): Ho-halo tiling instead of relying on Ct=1 fitting.


def _avgpool_kernel(x_ref, o_ref, *, kh, kw, sh, sw, ph, pw):
    # x_ref: (1, Ct, H, W) NCHW input block, W on the lane axis.
    # o_ref: (1, Ct, Ho, Wo) pooled output block.
    _, Ct, H, W = x_ref.shape
    Ho, Wo = o_ref.shape[2], o_ref.shape[3]
    inv = 1.0 / float(kh * kw)

    x = x_ref[0].astype(jnp.float32)                       # (Ct, H, W)

    # W-direction pooling matrix (W, Wo): column ow selects the kw input
    # columns of window ow.  Columns falling into the zero padding (or past
    # the right edge under floor-mode truncation) are simply absent, which is
    # exactly count_include_pad=True with zero padding.  1/(kh*kw) folded in.
    w_i = lax.broadcasted_iota(jnp.int32, (W, Wo), 0)
    ow_i = lax.broadcasted_iota(jnp.int32, (W, Wo), 1)
    w0 = ow_i * sw - pw
    aw = jnp.where((w_i >= w0) & (w_i < w0 + kw), inv, 0.0).astype(jnp.float32)

    # H-direction pooling matrix, pre-transposed to (Ho, H) so both einsums
    # below are the canonical batched-matmul contraction pattern.
    oh_i = lax.broadcasted_iota(jnp.int32, (Ho, H), 0)
    h_i = lax.broadcasted_iota(jnp.int32, (Ho, H), 1)
    h0 = oh_i * sh - ph
    ah = jnp.where((h_i >= h0) & (h_i < h0 + kh), 1.0, 0.0).astype(jnp.float32)

    # Separable pooling as two batched MXU matmuls (no lane-strided slices,
    # no reshapes, no concatenate copies, no XLU work).
    aw_b = jnp.broadcast_to(aw, (Ct, W, Wo))               # (Ct, W, Wo)
    ah_b = jnp.broadcast_to(ah, (Ct, Ho, H))               # (Ct, Ho, H)
    rs = jnp.einsum("chw,cwo->cho", x, aw_b,
                    precision=lax.Precision.HIGHEST,
                    preferred_element_type=jnp.float32)    # (Ct, H, Wo)
    out = jnp.einsum("cqh,cho->cqo", ah_b, rs,
                     precision=lax.Precision.HIGHEST,
                     preferred_element_type=jnp.float32)   # (Ct, Ho, Wo)

    o_ref[0] = out.astype(o_ref.dtype)


def avg_pool2d_pallas(x, kernel_size, stride=None, padding=0):
    """F.avg_pool2d(x, kernel_size, padding=padding, stride=stride), NCHW in/out."""
    kh, kw = _pair(kernel_size)
    sh, sw = (kh, kw) if stride is None else _pair(stride)
    ph, pw = _pair(padding)

    if x.ndim != 4:
        raise ValueError("expected NCHW input")
    if ph > kh // 2 or pw > kw // 2:
        raise ValueError("padding must be <= kernel_size // 2 (PyTorch rule)")
    # Only the F.avg_pool2d defaults used by SimpleAvgPool2dModule are
    # implemented: ceil_mode=False, count_include_pad=True, divisor_override=None.

    N, C, H, W = x.shape
    Ho = (H + 2 * ph - kh) // sh + 1
    Wo = (W + 2 * pw - kw) // sw + 1
    if Ho <= 0 or Wo <= 0:
        raise ValueError("pooling window larger than (padded) input")

    # Generation-aware VMEM sizing: v7x has 64 MiB/TC, v5e/v6e have 128 MiB.
    vmem_cap = _vmem_capacity_bytes()
    budget = vmem_cap // 6
    vmem_limit = min(vmem_cap // 2, 64 * 1024 * 1024)

    Ct = _choose_c_tile(C, H, W, Ho, Wo, x.dtype.itemsize, budget)
    nct = C // Ct

    kernel = functools.partial(
        _avgpool_kernel, kh=kh, kw=kw, sh=sh, sw=sw, ph=ph, pw=pw)

    cost = pl.CostEstimate(
        flops=2 * N * C * H * Wo * (W + Ho),
        transcendentals=0,
        bytes_accessed=N * C * (H * W + Ho * Wo) * x.dtype.itemsize,
    )

    return pl.pallas_call(
        kernel,
        out_shape=jax.ShapeDtypeStruct((N, C, Ho, Wo), x.dtype),
        grid=(N, nct),
        in_specs=[pl.BlockSpec((1, Ct, H, W), lambda n, c: (n, c, 0, 0))],
        out_specs=pl.BlockSpec((1, Ct, Ho, Wo), lambda n, c: (n, c, 0, 0)),
        compiler_params=pltpu.CompilerParams(
            dimension_semantics=("parallel", "parallel"),
            vmem_limit_bytes=vmem_limit,
        ),
        cost_estimate=cost,
    )(x)


def _avg_pool2d_ref(x, kernel_size, stride=None, padding=0):
    # Pure-JAX reference (matches F.avg_pool2d defaults).
    kh, kw = _pair(kernel_size)
    sh, sw = (kh, kw) if stride is None else _pair(stride)
    ph, pw = _pair(padding)
    xp = jnp.pad(x, ((0, 0), (0, 0), (ph, ph), (pw, pw)))
    summed = lax.reduce_window(
        xp.astype(jnp.float32),
        0.0,
        lax.add,
        window_dimensions=(1, 1, kh, kw),
        window_strides=(1, 1, sh, sw),
        padding="VALID",
    )
    return (summed / float(kh * kw)).astype(x.dtype)


if __name__ == "__main__":
    # Module config: 3x3 window, stride defaulting to kernel_size, padding=1 —
    # the same forward as SimpleAvgPool2dModule(3, None, 1).
    kernel_size = 3
    stride = None
    padding = 1

    key = jax.random.PRNGKey(0)
    x = jax.random.normal(key, (2, 4, 16, 16), dtype=jnp.float32)

    fn = jax.jit(functools.partial(
        avg_pool2d_pallas, kernel_size=kernel_size, stride=stride, padding=padding))
    out = jax.block_until_ready(fn(x))

    ref = _avg_pool2d_ref(x, kernel_size, stride=stride, padding=padding)
    assert out.shape == ref.shape, (out.shape, ref.shape)
    assert jnp.allclose(out, ref, atol=1e-5, rtol=1e-5)

    print("KERNEL_OK")
</pallas_src>

<mosaic_0001>
module attributes {stable_mosaic.version = 11 : i64} {
  func.func @_avgpool_kernel(%arg0: i32, %arg1: i32, %arg2: memref<1x4x16x16xf32, #tpu.memory_space<vmem>>, %arg3: memref<1x4x6x6xf32, #tpu.memory_space<vmem>>) attributes {dimension_semantics = [#tpu.dimension_semantics<parallel>, #tpu.dimension_semantics<parallel>], iteration_bounds = array<i64: 2, 1>, scalar_prefetch = 0 : i64, scratch_operands = 0 : i64, tpu.core_type = #tpu.core_type<tc>, window_params = [{transform_indices = @transform_0, window_bounds = array<i64: 1, 4, 16, 16>}, {transform_indices = @transform_1, window_bounds = array<i64: 1, 4, 6, 6>}]} {
    %c0 = arith.constant 0 : index
    %c0_0 = arith.constant 0 : index
    %c0_1 = arith.constant 0 : index
    %c0_2 = arith.constant 0 : index
    %0 = vector.load %arg2[%c0, %c0_0, %c0_1, %c0_2] : memref<1x4x16x16xf32, #tpu.memory_space<vmem>>, vector<1x4x16x16xf32>
    %1 = vector.shape_cast %0 : vector<1x4x16x16xf32> to vector<4x16x16xf32>
    %2 = tpu.iota {dimensions = array<i32: 0>} : vector<16x6xi32>
    %3 = tpu.iota {dimensions = array<i32: 1>} : vector<16x6xi32>
    %c3_i32 = arith.constant 3 : i32
    %4 = vector.broadcast %c3_i32 : i32 to vector<16x6xi32>
    %5 = arith.muli %3, %4 : vector<16x6xi32>
    %c1_i32 = arith.constant 1 : i32
    %6 = vector.broadcast %c1_i32 : i32 to vector<16x6xi32>
    %7 = arith.subi %5, %6 : vector<16x6xi32>
    %8 = arith.cmpi sge, %2, %7 : vector<16x6xi32>
    %c3_i32_3 = arith.constant 3 : i32
    %9 = vector.broadcast %c3_i32_3 : i32 to vector<16x6xi32>
    %10 = arith.addi %7, %9 : vector<16x6xi32>
    %11 = arith.cmpi slt, %2, %10 : vector<16x6xi32>
    %12 = arith.andi %8, %11 : vector<16x6xi1>
    %cst = arith.constant 0.111111112 : f32
    %cst_4 = arith.constant 0.000000e+00 : f32
    %13 = vector.broadcast %cst : f32 to vector<16x6xf32>
    %14 = vector.broadcast %cst_4 : f32 to vector<16x6xf32>
    %15 = arith.select %12, %13, %14 : vector<16x6xi1>, vector<16x6xf32>
    %16 = tpu.iota {dimensions = array<i32: 0>} : vector<6x16xi32>
    %17 = tpu.iota {dimensions = array<i32: 1>} : vector<6x16xi32>
    %c3_i32_5 = arith.constant 3 : i32
    %18 = vector.broadcast %c3_i32_5 : i32 to vector<6x16xi32>
    %19 = arith.muli %16, %18 : vector<6x16xi32>
    %c1_i32_6 = arith.constant 1 : i32
    %20 = vector.broadcast %c1_i32_6 : i32 to vector<6x16xi32>
    %21 = arith.subi %19, %20 : vector<6x16xi32>
    %22 = arith.cmpi sge, %17, %21 : vector<6x16xi32>
    %c3_i32_7 = arith.constant 3 : i32
    %23 = vector.broadcast %c3_i32_7 : i32 to vector<6x16xi32>
    %24 = arith.addi %21, %23 : vector<6x16xi32>
    %25 = arith.cmpi slt, %17, %24 : vector<6x16xi32>
    %26 = arith.andi %22, %25 : vector<6x16xi1>
    %cst_8 = arith.constant 1.000000e+00 : f32
    %cst_9 = arith.constant 0.000000e+00 : f32
    %27 = vector.broadcast %cst_8 : f32 to vector<6x16xf32>
    %28 = vector.broadcast %cst_9 : f32 to vector<6x16xf32>
    %29 = arith.select %26, %27, %28 : vector<6x16xi1>, vector<6x16xf32>
    %30 = vector.shape_cast %15 : vector<16x6xf32> to vector<1x16x6xf32>
    %31 = vector.broadcast %30 : vector<1x16x6xf32> to vector<4x16x6xf32>
    %32 = vector.shape_cast %29 : vector<6x16xf32> to vector<1x6x16xf32>
    %33 = vector.broadcast %32 : vector<1x6x16xf32> to vector<4x6x16xf32>
    "tpu.trace_start"() <{level = 10 : i32, message = "chw,cwo->cho"}> : () -> ()
    %cst_10 = arith.constant dense<0.000000e+00> : vector<4x16x6xf32>
    %34 = tpu.matmul %1, %31, %cst_10 {dimension_numbers = #tpu.dot_dimension_numbers<[2], [1], [1], [2], [0, 0, 0, 1, 1, 2], [0], [0]>, precision = #tpu.contract_precision<fp32>} : vector<4x16x16xf32>, vector<4x16x6xf32>, vector<4x16x6xf32> -> vector<4x16x6xf32>
    "tpu.trace_stop"() : () -> ()
    "tpu.trace_start"() <{level = 10 : i32, message = "cqh,cho->cqo"}> : () -> ()
    %cst_11 = arith.constant dense<0.000000e+00> : vector<4x6x6xf32>
    %35 = tpu.matmul %33, %34, %cst_11 {dimension_numbers = #tpu.dot_dimension_numbers<[2], [1], [1], [2], [0, 0, 0, 1, 1, 2], [0], [0]>, precision = #tpu.contract_precision<fp32>} : vector<4x6x16xf32>, vector<4x16x6xf32>, vector<4x6x6xf32> -> vector<4x6x6xf32>
    "tpu.trace_stop"() : () -> ()
    %c0_12 = arith.constant 0 : index
    %c0_13 = arith.constant 0 : index
    %c0_14 = arith.constant 0 : index
    %c0_15 = arith.constant 0 : index
    %36 = vector.load %arg3[%c0_12, %c0_13, %c0_14, %c0_15] : memref<1x4x6x6xf32, #tpu.memory_space<vmem>>, vector<1x4x6x6xf32>
    %37 = vector.shape_cast %36 : vector<1x4x6x6xf32> to vector<4x6x6xf32>
    %38 = vector.shape_cast %35 : vector<4x6x6xf32> to vector<1x4x6x6xf32>
    tpu.vector_store %arg3[%c0_12, %c0_13, %c0_14, %c0_15], %38 {strides = array<i32>} : memref<1x4x6x6xf32, #tpu.memory_space<vmem>>, vector<1x4x6x6xf32>,
    return
  }
  func.func @transform_0(%arg0: i32, %arg1: i32) -> (i32, i32, i32, i32) {
    %c0_i32 = arith.constant 0 : i32
    %c0_i32_0 = arith.constant 0 : i32
    %c0_i32_1 = arith.constant 0 : i32
    return %arg0, %arg1, %c0_i32, %c0_i32_0 : i32, i32, i32, i32
  }
  func.func @transform_1(%arg0: i32, %arg1: i32) -> (i32, i32, i32, i32) {
    %c0_i32 = arith.constant 0 : i32
    %c0_i32_0 = arith.constant 0 : i32
    %c0_i32_1 = arith.constant 0 : i32
    return %arg0, %arg1, %c0_i32, %c0_i32_0 : i32, i32, i32, i32
  }
}

</mosaic_0001>

<bundles_post_ra>
// kernel: avg_pool2d_pallas.1
= control target key start
LH: loop header
LB: loop body
LE: loop exit
PB: predicated region body
PF: predicated region fallthrough
CT: control target
= control target key end

     0   :  { %6 = vsyncpa [#allocation3], 0  ;;  %s5514_s0 = inlined_call_operand.hbm [shape: f32[2,4,16,16], index: 0, kind: input, shape index: {}]   ;;  %s5515_s1 = inlined_call_operand.vmem [shape: f32[2,4,6,6], index: 1, kind: output, shape index: {}]  }
   0x1   :  { %8 = vsyncpa [#allocation3 + $0x1], 0  ;;  %s5108_s6 = smov 0   ;;  %s5110_s7 = smov 0  }
   0x2   :  { %s5112_s8 = smov 0   ;;  %s5114_s9 = smov 0  }
   0x3   :  { %s5116_s10 = smov 0   ;;  %s5118_s11 = smov 0  }
   0x4 LB: > { %s4169_s12 = sadd.s32 4294967295, %s5090_s11   ;;  %s26_s13 = sadd.s32 1, %s5086_s10  ;;  %s5090_s11 = sphi %s5118_s11, %s14_s11   ;;  %s5086_s10 = sphi %s5116_s10, %s5523_s10   ;;  %s5082_s9 = sphi %s5114_s9, %s5522_s9   ;;  %s5078_s8 = sphi %s5112_s8, %s5521_s8   ;;  %s5074_s7 = sphi %s5110_s7, %s5520_s7   ;;  %s5070_s6 = sphi %s5108_s6, %s5519_s6  }
   0x5   : > { %p28_p0 = scmp.ge.s32.totalorder %s26_s13, 2  ;;  %s35_s14 = sadd.s32 1, %s5078_s8 }
   0x6   : > { %p42_p1 = scmp.ne.s32.totalorder %s5078_s8, %s5074_s7  ;;  %p43_p2 = scmp.eq.s32.totalorder %s5090_s11, 0 }
   0x7   : > { %s5525_s13 = smov (%p28_p0, %s26_s13), 0  ;;  %p48_p4 = scmp.ne.s32.totalorder %s5074_s7, %s5070_s6 }
   0x8   : > { %p5144_p3 = por %p43_p2, %p42_p1  ;;  %s30_s16 = ssub.s32 %s5086_s10, %s5525_s13 }
   0x9   : > { %p49_p5 = scmp.eq.s32.totalorder %s4169_s12, 0  ;;  %p33_p6 = scmp.eq.s32.totalorder %s30_s16, 0 }
   0xa   : > { %p4956_p8 = scmp.lt.s32.totalorder %s5090_s11, 2  ;;  %s100_s19 = sand.u32 1, %s5078_s8  }
   0xb   : > { %p5151_p7 = por %p49_p5, %p48_p4  ;;  %s4196_s20 = sshll.u32 %s5086_s10, 10 }
   0xc   : > { %s5157_s18 = scalar_select %p33_p6, %s5078_s8, %s35_s14  }
   0xd   : > { %s4173_s21 = sshll.u32 %s100_s19, 6  ;;  %s5164_s24 = scalar_lea.hbm %s5514_s0, %s4196_s20 }
   0xe   : > { %s104_s25 = scalar_lea.vmem [#allocation2], %s4173_s21  ;;  %p5168_p9 = pnand %p4956_p8, %p5144_p3 }
   0xf   : > { %s114_s26 = sshll.u32 %s104_s25, 4  ;;  %s5174_s28 = scalar_lea.sflag [#allocation3], %s100_s19  ;;  %s5172_s26 = int_to_ptr.vmem [resolvable:$true] %s114_s26 }
  0x10   : > { %s5010_s29 = scalar_lea.hbm %s5164_s24, 1024  ;;  %p5012_p11 = pneg %p5168_p9 }
  0x11   : > { %p5011_p10 = scmp.ne.s32.totalorder %s5164_s24, %s5010_s29  ;;  %s5015_s3 = scalar_lea.hbm %s5514_s0, 2048 }
  0x12   : > { %p5016_p0 = scmp.lt.u32.totalorder %s5164_s24, %s5514_s0  ;;  %p5017_p1 = scmp.lt.u32.totalorder %s5015_s3, %s5010_s29 }
  0x13   : > { %p5013_p12 = pnand %p5012_p11, %p5011_p10  ;;  %p5019_p3 = scmp.lt.u32.totalorder %s5010_s29, %s5164_s24 }
  0x14   : > { %p5018_p2 = por %p5017_p1, %p5016_p0 }
  0x15   : > { %p5014_p13 = pneg %p5013_p12 }
  0x16   : > { %p5020_p4 = por %p5019_p3, %p5018_p2 }
  0x18   : > { %p5021_p5 = pnand %p5020_p4, %p5014_p13 }
  0x1a   : > { %5024 = shalt.err (!%p5021_p5)
}
  0x1b   : > { %s5025_s6 = scalar_lea.vmem %s5172_s26, 1024  ;;  %s5092_s12 = smov [#allocation2]  }
  0x1c   : > { %p5026_p6 = scmp.ne.s32.totalorder %s5172_s26, %s5025_s6  ;;  %s5030_s14 = sshll.u32 %s5092_s12, 4  ;;  %s5031_s14 = int_to_ptr.vmem [resolvable:$false] %s5030_s14 }
  0x1d   : > { %s5032_s15 = scalar_lea.vmem %s5031_s14, 2048  ;;  %p5033_p12 = scmp.lt.s32.totalorder %s5172_s26, %s5031_s14 }
  0x1e   : > { %p5028_p8 = pnand %p5026_p6, %p5012_p11  ;;  %p5034_p0 = scmp.lt.s32.totalorder %s5032_s15, %s5025_s6 }
  0x20   : > { %p5029_p10 = pneg %p5028_p8  ;;  %p5035_p1 = por %p5034_p0, %p5033_p12 }
  0x22   : > { %p5036_p2 = pnand %p5035_p1, %p5029_p10 }
  0x24   : > { %5039 = shalt.err (!%p5036_p2)
}
  0x25   : > { %s5093_s16 = smov 128   ;;  %s5094_s19 = smov 8  }
  0x26   : > { %4955 = dma.hbm_to_vmem [thread:$0]  (!%p5168_p9), %s5164_s24, 1024, %s5172_s26, %s5174_s28, %s5093_s16, %s5093_s16, %s5094_s19  }
  0x27   : > { %p4176_p11 = scmp.ge.s32.totalorder %s5090_s11, 1  ;;  %p122_p13 = scmp.lt.s32.totalorder %s5090_s11, 3 }
  0x29   : > { %p123_p3 = pnand %p4176_p11, %p122_p13 }
  0x2a   : > { %s128_s20 = sand.u32 (!%p123_p3), 1, %s5074_s7  }
  0x2b   : > { %126 = sbr.rel (%p123_p3) target bundleno = 630 (0x276), region = 24  ;;  %s4177_s21 = sshll.u32 (!%p123_p3), %s128_s20, 6 }
  0x2c   : > { %s129_s22 = scalar_lea.sflag (!%p123_p3), [#allocation3], %s128_s20  ;;  %s5205_s23 = scalar_lea.vmem (!%p123_p3), [#allocation2], %s4177_s21 }
  0x32   : > { %5065 = dma.done.wait (%p5151_p7), %s129_s22, 1024  }
  0x33   : > { %5067 = vsyncadd (%p5151_p7), %s129_s22, 4294966272  ;;  %v174_v0 = vlaneseq  ;;  %vm197_vm0 = vcmask 130048   ;;  %v166_v6 = vld [vmem:[%s5205_s23] sm:$0xff]  ;;  %v168_v7 = vld [vmem:[%s5205_s23 + $0x10] sm:$0xff]  ;;  %v5095_v20 = vmov 0.0   ;;  %vm5097_vm7 = vmmov 0  }
  0x34   : > { %v167_v8 = vld [vmem:[%s5205_s23 + $0x8] sm:$0xff]  ;;  %v199_v10 = vsel %vm197_vm0, %v166_v6, 0  ;;  %v169_v11 = vld [vmem:[%s5205_s23 + $0x18] sm:$0xff]  ;;  %v707_v13 = vsel %vm197_vm0, %v168_v7, 0  ;;  %v170_v52 = vld [vmem:[%s5205_s23 + $0x20] sm:$0xff]  ;;  %p157_p7 = scmp.lt.s32.totalorder %s5082_s9, 1 }
  0x35   : > { %v5211_v1 = vshrl.u32 %v174_v0, 7  ;;  %v5213_v2 = vand.u32 127, %v174_v0  ;;  %v5223_v12 = vand.u32 4294901760, %v199_v10  ;;  %v202_v14 = vsel %vm197_vm0, %v167_v8, 0  ;;  %v172_v53 = vld [vmem:[%s5205_s23 + $0x30] sm:$0xff]  ;;  %v171_v54 = vld [vmem:[%s5205_s23 + $0x28] sm:$0xff] }
  0x36   : > { %v710_v15 = vsel %vm197_vm0, %v169_v11, 0  ;;  %v5229_v16 = vand.u32 4294901760, %v707_v13  ;;  %v5231_v17 = vand.u32 4294901760, %v202_v14  ;;  %v173_v55 = vld [vmem:[%s5205_s23 + $0x38] sm:$0xff]  ;;  %v1215_v56 = vsel %vm197_vm0, %v170_v52, 0  ;;  %s5527_s9 = smov (!%p157_p7, %s5082_s9), 1 }
  0x37   : > { %v176_v3 = vadd.s32 8, %v5211_v1  ;;  %v179_v4 = vmul.u32 3, %v5213_v2  ;;  %v5234_v18 = vsub.f32 %v199_v10, %v5223_v12  ;;  %v5236_v19 = vand.u32 4294901760, %v710_v15  ;;  %s4197_s17 = sshll.u32 %s5527_s9, 5 }
  0x38   : > { %v780_v22 = vsub.f32 %v707_v13, %v5229_v16  ;;  %v5242_v23 = vsub.f32 %v202_v14, %v5231_v17  ;;  %v1723_v57 = vsel %vm197_vm0, %v172_v53, 0  ;;  %v1218_v58 = vsel %vm197_vm0, %v171_v54, 0  ;;  %s164_s26 = scalar_lea.vmem %s5515_s1, %s4197_s17 }
  0x39   : > { %v4180_v5 = vadd.s32 4294967295, %v179_v4  ;;  %v273_v26 = vand.u32 4294901760, %v5234_v18  ;;  %v5247_v27 = vsub.f32 %v710_v15, %v5236_v19  ;;  %v1726_v59 = vsel %vm197_vm0, %v173_v55, 0 }
  0x3a   : > { %v781_v29 = vand.u32 4294901760, %v780_v22  ;;  %v283_v30 = vand.u32 4294901760, %v5242_v23  ;;  %v5297_v60 = vand.u32 4294901760, %v1215_v56  ;;  %v5299_v61 = vand.u32 4294901760, %v1723_v57 }
  0x3b   : > { %vm181_vm1 = vcmp.ge.s32.totalorder %v5211_v1, %v4180_v5  ;;  %vm182_vm2 = vcmp.ge.s32.totalorder %v176_v3, %v4180_v5  ;;  %v183_v9 = vadd.s32 3, %v4180_v5  ;;  %v274_v31 = vsub.f32 %v5234_v18, %v273_v26 }
  0x3c   : > { %v791_v32 = vand.u32 4294901760, %v5247_v27  ;;  %v782_v35 = vsub.f32 %v780_v22, %v781_v29  ;;  %v284_v36 = vsub.f32 %v5242_v23, %v283_v30  ;;  %v5303_v62 = vand.u32 4294901760, %v1218_v58 }
  0x3d   : > { %vm184_vm3 = vcmp.lt.s32.totalorder %v5211_v1, %v183_v9  ;;  %vm185_vm4 = vcmp.lt.s32.totalorder %v176_v3, %v183_v9  ;;  %v275_v38 = vand.u32 4294901760, %v274_v31  ;;  %v5305_v63 = vand.u32 4294901760, %v1726_v59 }
  0x3e   : > { %vm186_vm5 = vmand %vm181_vm1, %vm184_vm3  ;;  %v792_v39 = vsub.f32 %v5247_v27, %v791_v32  ;;  %v783_v41 = vand.u32 4294901760, %v782_v35  ;;  %v285_v42 = vand.u32 4294901760, %v284_v36  ;;  %v1288_v0 = vsub.f32 %v1215_v56, %v5297_v60 }
  0x3f   : > { %vm187_vm6 = vmand %vm182_vm2, %vm185_vm4  ;;  %v188_v21 = vsel %vm186_vm5, 0.11111111, %v5095_v20  ;;  %4370 = vmatprep.mubr.f32.mxu0 %v275_v38  ;;  %v1796_v3 = vsub.f32 %v1723_v57, %v5299_v61  ;;  %v1298_v4 = vsub.f32 %v1218_v58, %v5303_v62  ;;  %v1806_v5 = vsub.f32 %v1726_v59, %v5305_v63 }
  0x40   : > { %v189_v24 = vsel %vm187_vm6, 0.11111111, %v5095_v20  ;;  %v205_v25 = vand.u32 4294901760, %v188_v21  ;;  %v793_v44 = vand.u32 4294901760, %v792_v39  ;;  %4412 = vmatprep.mubr.f32.mxu1 %v783_v41  ;;  %v1289_v6 = vand.u32 4294901760, %v1288_v0 }
  0x41   : > { %v208_v28 = vand.u32 4294901760, %v189_v24  ;;  %v1797_v7 = vand.u32 4294901760, %v1796_v3  ;;  %v1299_v8 = vand.u32 4294901760, %v1298_v4  ;;  %v1807_v9 = vand.u32 4294901760, %v1806_v5 }
  0x42   : > { %v293_v33 = vsub.f32 %v188_v21, %v205_v25  ;;  %v1290_v10 = vsub.f32 %v1288_v0, %v1289_v6  ;;  %vm4069_vm11 = vcmask 46080  }
  0x43   : > { %v5252_v34 = vpack.c.bf16 %v208_v28, %v205_v25  ;;  %v300_v37 = vsub.f32 %v189_v24, %v208_v28  ;;  %v1798_v11 = vsub.f32 %v1796_v3, %v1797_v7  ;;  %v1300_v13 = vsub.f32 %v1298_v4, %v1299_v8 }
  0x44   : > { %v294_v40 = vand.u32 4294901760, %v293_v33  ;;  %v1808_v14 = vsub.f32 %v1806_v5, %v1807_v9  ;;  %v1291_v15 = vand.u32 4294901760, %v1290_v10 }
  0x45   : > { %4703 = vmatprep.subr.bf16.mxu0 %v5252_v34  ;;  %4727 = vmatprep.subr.bf16.mxu1 %v5252_v34  ;;  %v301_v43 = vand.u32 4294901760, %v300_v37  ;;  %v5266_v50 = vpack.c.bf16 %v300_v37, %v293_v33  ;;  %v1301_v21 = vand.u32 4294901760, %v1300_v13 }
  0x46   : > { %4705 = vmatpush3.bf16.msra.mxu0 %v5252_v34  ;;  %4729 = vmatpush3.bf16.msra.mxu1 %v5252_v34  ;;  %v295_v45 = vsub.f32 %v293_v33, %v294_v40 }
  0x47   : > { %v302_v46 = vsub.f32 %v300_v37, %v301_v43  ;;  %v5281_v51 = vpack.c.bf16 %v301_v43, %v294_v40 }
  0x48   : > { %v296_v47 = vand.u32 4294901760, %v295_v45 }
  0x49   : > { %4371 = vmatmul.mubr.f32.vlgmr.msra.gmra.mrb[0].mxu0 %v285_v42  ;;  %4413 = vmatmul.mubr.f32.vlgmr.msra.gmra.mrb[0].mxu1 %v793_v44  ;;  %v303_v48 = vand.u32 4294901760, %v302_v46 }
  0x4a   : > { %4377 = vmatprep.mubr.f32.mxu0 %v5223_v12  ;;  %4419 = vmatprep.mubr.f32.mxu1 %v5229_v16 }
  0x4b   : > { %v5264_v49 = vpack.c.bf16 %v303_v48, %v296_v47 }
  0x4d   : > { %4707 = vmatprep.subr.bf16.mxu0 %v5264_v49  ;;  %4731 = vmatprep.subr.bf16.mxu1 %v5264_v49 }
  0x4e   : > { %4709 = vmatpush3.bf16.msra.mxu0 %v5264_v49  ;;  %4733 = vmatpush3.bf16.msra.mxu1 %v5264_v49 }
  0x4f   : > { %4711 = vmatprep.subr.bf16.mxu0 %v5266_v50  ;;  %4735 = vmatprep.subr.bf16.mxu1 %v5266_v50 }
  0x51   : > { %4378 = vmatmul.mubr.f32.vlgmr.msra.gmra.mrb[0].mxu0 %v5231_v17  ;;  %4420 = vmatmul.mubr.f32.vlgmr.msra.gmra.mrb[0].mxu1 %v5236_v19 }
  0x52   : > { %4713 = vmatpush3.bf16.msra.mxu0 %v5266_v50  ;;  %4737 = vmatpush3.bf16.msra.mxu1 %v5266_v50 }
  0x53   : > { %4384 = vmatprep.mubr.f32.mxu0 %v5234_v18  ;;  %4426 = vmatprep.mubr.f32.mxu1 %v780_v22  ;;  %v1799_v18 = vand.u32 4294901760, %v1798_v11  ;;  %v1809_v22 = vand.u32 4294901760, %v1808_v14 }
  0x54   : > { %4715 = vmatprep.subr.bf16.mxu0 %v5252_v34  ;;  %4739 = vmatprep.subr.bf16.mxu1 %v5252_v34 }
  0x59   : > { %4385 = vmatmul.mubr.f32.vlgmr.msra.gmra.mrb[0].mxu0 %v5242_v23  ;;  %4427 = vmatmul.mubr.f32.vlgmr.msra.gmra.mrb[0].mxu1 %v5247_v27 }
  0x5a   : > { %4717 = vmatpush3.bf16.msra.mxu0 %v5252_v34  ;;  %4741 = vmatpush3.bf16.msra.mxu1 %v5252_v34 }
  0x5b   : > { %4391 = vmatprep.mubr.f32.mxu0 %v273_v26  ;;  %4433 = vmatprep.mubr.f32.mxu1 %v781_v29 }
  0x5c   : > { %4719 = vmatprep.subr.bf16.mxu0 %v5281_v51  ;;  %4743 = vmatprep.subr.bf16.mxu1 %v5281_v51 }
  0x61   : > { %4392 = vmatmul.mubr.f32.vlgmr.msra.gmra.mrb[0].mxu0 %v283_v30  ;;  %4434 = vmatmul.mubr.f32.vlgmr.msra.gmra.mrb[0].mxu1 %v791_v32 }
  0x62   : > { %4721 = vmatpush3.bf16.msra.mxu0 %v5281_v51  ;;  %4745 = vmatpush3.bf16.msra.mxu1 %v5281_v51 }
  0x63   : > { %4398 = vmatprep.mubr.f32.mxu0 %v5223_v12  ;;  %4440 = vmatprep.mubr.f32.mxu1 %v5229_v16 }
  0x64   : > { %4723 = vmatprep.subr.bf16.mxu0 %v5252_v34  ;;  %4747 = vmatprep.subr.bf16.mxu1 %v5252_v34 }
  0x69   : > { %4399 = vmatmul.mubr.f32.vlgmr.msra.gmra.mrb[0].mxu0 %v5231_v17  ;;  %4441 = vmatmul.mubr.f32.vlgmr.msra.gmra.mrb[0].mxu1 %v5236_v19 }
  0x6a   : > { %4725 = vmatpush3.bf16.msra.mxu0 %v5252_v34  ;;  %4749 = vmatpush3.bf16.msra.mxu1 %v5252_v34 }
  0x6b   : > { %4405 = vmatprep.mubr.f32.mxu0 %v5223_v12  ;;  %4447 = vmatprep.mubr.f32.mxu1 %v5229_v16  ;;  %v5096_v12 = vmov 0.0|0.0   ;;  %v190_v16 = vmul.u32 3, %v5211_v1 }
  0x6c   : > { %4751 = vmatprep.subr.bf16.mxu0 %v5252_v34  ;;  %4775 = vmatprep.subr.bf16.mxu1 %v5252_v34 }
  0x71   : > { %4406 = vmatmul.mubr.f32.vlgmr.msra.gmra.mrb[0].mxu0 %v5231_v17  ;;  %4448 = vmatmul.mubr.f32.vlgmr.msra.gmra.mrb[0].mxu1 %v5236_v19  ;;  %v4181_v17 = vadd.s32 4294967295, %v190_v16 }
  0x72   : > { %4753 = vmatpush3.bf16.msra.mxu0 %v5252_v34  ;;  %4777 = vmatpush3.bf16.msra.mxu1 %v5252_v34 }
  0x73   : > { %4454 = vmatprep.mubr.f32.mxu0 %v1291_v15  ;;  %4496 = vmatprep.mubr.f32.mxu1 %v1799_v18  ;;  %v193_v19 = vadd.s32 3, %v4181_v17  ;;  %vm192_vm8 = vcmp.ge.s32.totalorder %v5213_v2, %v4181_v17 }
  0x74   : > { %4755 = vmatprep.subr.bf16.mxu0 %v5264_v49  ;;  %4779 = vmatprep.subr.bf16.mxu1 %v5264_v49 }
  0x75   : > { %4455 = vmatmul.mubr.f32.vlgmr.msra.gmra.mrb[2].mxu0 %v1301_v21  ;;  %4497 = vmatmul.mubr.f32.vlgmr.msra.gmra.mrb[2].mxu1 %v1809_v22  ;;  %vm194_vm9 = vcmp.lt.s32.totalorder %v5213_v2, %v193_v19 }
  0x76   : > { %4757 = vmatpush3.bf16.msra.mxu0 %v5264_v49  ;;  %4781 = vmatpush3.bf16.msra.mxu1 %v5264_v49  ;;  %vm195_vm10 = vmand %vm192_vm8, %vm194_vm9 }
  0x77   : > { %4461 = vmatprep.mubr.f32.mxu0 %v5297_v60  ;;  %4503 = vmatprep.mubr.f32.mxu1 %v5299_v61  ;;  %v5371_v23 = vsel %vm195_vm10, 1.0, %v5095_v20 }
  0x78   : > { %4759 = vmatprep.subr.bf16.mxu0 %v5266_v50  ;;  %4783 = vmatprep.subr.bf16.mxu1 %v5266_v50  ;;  %v2231_v24 = vsel %vm197_vm0, %v5371_v23, 0 }
  0x79   : > { %v5375_v25 = vsub.f32 %v2231_v24, %v2231_v24 }
  0x7b   : > { %v5378_v26 = vand.u32 4294901760, %v5375_v25 }
  0x7d   : > { %4462 = vmatmul.mubr.f32.vlgmr.msra.gmra.mrb[2].mxu0 %v5303_v62  ;;  %4504 = vmatmul.mubr.f32.vlgmr.msra.gmra.mrb[2].mxu1 %v5305_v63  ;;  %v2303_v2 = vsub.f32 %v5375_v25, %v5378_v26 }
  0x7e   : > { %4761 = vmatpush3.bf16.msra.mxu0 %v5266_v50  ;;  %4785 = vmatpush3.bf16.msra.mxu1 %v5266_v50 }
  0x7f   : > { %4468 = vmatprep.mubr.f32.mxu0 %v1288_v0  ;;  %4510 = vmatprep.mubr.f32.mxu1 %v1796_v3  ;;  %v5382_v42 = vand.u32 4294901760, %v2303_v2 }
  0x80   : > { %4763 = vmatprep.subr.bf16.mxu0 %v5252_v34  ;;  %4787 = vmatprep.subr.bf16.mxu1 %v5252_v34 }
  0x85   : > { %4469 = vmatmul.mubr.f32.vlgmr.msra.gmra.mrb[2].mxu0 %v1298_v4  ;;  %4511 = vmatmul.mubr.f32.vlgmr.msra.gmra.mrb[2].mxu1 %v1806_v5 }
  0x86   : > { %4765 = vmatpush3.bf16.msra.mxu0 %v5252_v34  ;;  %4789 = vmatpush3.bf16.msra.mxu1 %v5252_v34 }
  0x87   : > { %4475 = vmatprep.mubr.f32.mxu0 %v1289_v6  ;;  %4517 = vmatprep.mubr.f32.mxu1 %v1797_v7 }
  0x88   : > { %4767 = vmatprep.subr.bf16.mxu0 %v5281_v51  ;;  %4791 = vmatprep.subr.bf16.mxu1 %v5281_v51 }
  0x8d   : > { %4476 = vmatmul.mubr.f32.vlgmr.msra.gmra.mrb[2].mxu0 %v1299_v8  ;;  %4518 = vmatmul.mubr.f32.vlgmr.msra.gmra.mrb[2].mxu1 %v1807_v9 }
  0x8e   : > { %4769 = vmatpush3.bf16.msra.mxu0 %v5281_v51  ;;  %4793 = vmatpush3.bf16.msra.mxu1 %v5281_v51 }
  0x8f   : > { %4482 = vmatprep.mubr.f32.mxu0 %v5297_v60  ;;  %4524 = vmatprep.mubr.f32.mxu1 %v5299_v61 }
  0x90   : > { %4771 = vmatprep.subr.bf16.mxu0 %v5252_v34  ;;  %4795 = vmatprep.subr.bf16.mxu1 %v5252_v34 }
  0x95   : > { %4483 = vmatmul.mubr.f32.vlgmr.msra.gmra.mrb[2].mxu0 %v5303_v62  ;;  %4525 = vmatmul.mubr.f32.vlgmr.msra.gmra.mrb[2].mxu1 %v5305_v63 }
  0x96   : > { %4773 = vmatpush3.bf16.msra.mxu0 %v5252_v34  ;;  %4797 = vmatpush3.bf16.msra.mxu1 %v5252_v34 }
  0x97   : > { %4489 = vmatprep.mubr.f32.mxu0 %v5297_v60  ;;  %4531 = vmatprep.mubr.f32.mxu1 %v5299_v61 }
  0x98   : > { %4798 = vmatprep.subr.bf16.mxu0 %v5096_v12  ;;  %4816 = vmatprep.subr.bf16.mxu1 %v5096_v12 }
  0x9d   : > { %4490 = vmatmul.mubr.f32.vlgmr.msra.gmra.mrb[2].mxu0 %v5303_v62  ;;  %4532 = vmatmul.mubr.f32.vlgmr.msra.gmra.mrb[2].mxu1 %v5305_v63 }
  0x9e   : > { %4538 = vmatprep.mubr.msk.f32.mxu0 %vm5097_vm7, %v5095_v20  ;;  %4580 = vmatprep.mubr.msk.f32.mxu1 %vm5097_vm7, %v5095_v20 }
 0x144   : > { %v4407_v27 = vpop.f32.mrb[0].mxu0  ;;  %v4449_v1 = vpop.f32.mrb[0].mxu1 }
 0x145   : > { %v2237_v28 = vand.u32 4294901760, %v4407_v27  ;;  %v2696_v29 = vand.u32 4294901760, %v4449_v1  ;;  %v696_v30 = vpop.f32.mrb[1].mxu0  ;;  %v1204_v31 = vpop.f32.mrb[1].mxu1 }
 0x146   : > { %v2234_v32 = vand.u32 4294901760, %v696_v30  ;;  %v2693_v33 = vand.u32 4294901760, %v1204_v31 }
 0x147   : > { %v2319_v34 = vsub.f32 %v4407_v27, %v2237_v28  ;;  %v2778_v35 = vsub.f32 %v4449_v1, %v2696_v29 }
 0x148   : > { %v4799_v36 = vpack.c.bf16 %v2237_v28, %v2234_v32  ;;  %v2312_v37 = vsub.f32 %v696_v30, %v2234_v32  ;;  %v4817_v38 = vpack.c.bf16 %v2696_v29, %v2693_v33  ;;  %v2771_v39 = vsub.f32 %v1204_v31, %v2693_v33 }
 0x149   : > { %v2320_v40 = vand.u32 4294901760, %v2319_v34  ;;  %v2779_v41 = vand.u32 4294901760, %v2778_v35 }
 0x14a   : > { %v2313_v43 = vand.u32 4294901760, %v2312_v37  ;;  %v4805_v44 = vpack.c.bf16 %v2319_v34, %v2312_v37  ;;  %v2772_v45 = vand.u32 4294901760, %v2771_v39  ;;  %v4823_v46 = vpack.c.bf16 %v2778_v35, %v2771_v39  ;;  %4800 = vmatpush3.bf16.msra.mxu0 %v4799_v36  ;;  %4818 = vmatpush3.bf16.msra.mxu1 %v4817_v38 }
 0x14b   : > { %v2321_v47 = vsub.f32 %v2319_v34, %v2320_v40  ;;  %v2780_v48 = vsub.f32 %v2778_v35, %v2779_v41  ;;  %4801 = vmatprep.subr.bf16.mxu0 %v5096_v12  ;;  %4819 = vmatprep.subr.bf16.mxu1 %v5096_v12 }
 0x14c   : > { %v2314_v49 = vsub.f32 %v2312_v37, %v2313_v43  ;;  %v2773_v50 = vsub.f32 %v2771_v39, %v2772_v45  ;;  %v4811_v51 = vpack.c.bf16 %v2320_v40, %v2313_v43  ;;  %v4829_v52 = vpack.c.bf16 %v2779_v41, %v2772_v45 }
 0x14d   : > { %v2322_v53 = vand.u32 4294901760, %v2321_v47  ;;  %v2781_v54 = vand.u32 4294901760, %v2780_v48  ;;  %4539 = vmatmul.mubr.f32.vlgmr.msra.gmra.mrb[4].mxu0 %v5382_v42  ;;  %4581 = vmatmul.mubr.f32.vlgmr.msra.gmra.mrb[4].mxu1 %v5382_v42 }
 0x14e   : > { %v2315_v55 = vand.u32 4294901760, %v2314_v49  ;;  %v2774_v56 = vand.u32 4294901760, %v2773_v50  ;;  %4545 = vmatprep.mubr.msk.f32.mxu0 %vm5097_vm7, %v5095_v20  ;;  %4587 = vmatprep.mubr.msk.f32.mxu1 %vm5097_vm7, %v5095_v20 }
 0x150   : > { %v4802_v57 = vpack.c.bf16 %v2322_v53, %v2315_v55  ;;  %v4820_v58 = vpack.c.bf16 %v2781_v54, %v2774_v56 }
 0x152   : > { %4803 = vmatpush3.bf16.msra.mxu0 %v4802_v57  ;;  %4821 = vmatpush3.bf16.msra.mxu1 %v4820_v58 }
 0x153   : > { %4804 = vmatprep.subr.bf16.mxu0 %v5096_v12  ;;  %4822 = vmatprep.subr.bf16.mxu1 %v5096_v12 }
 0x155   : > { %4546 = vmatmul.mubr.msk.f32.vlgmr.msra.gmra.mrb[4].mxu0 %vm197_vm0, %v5371_v23  ;;  %4588 = vmatmul.mubr.msk.f32.vlgmr.msra.gmra.mrb[4].mxu1 %vm197_vm0, %v5371_v23 }
 0x156   : > { %4806 = vmatpush3.bf16.msra.mxu0 %v4805_v44  ;;  %4824 = vmatpush3.bf16.msra.mxu1 %v4823_v46 }
 0x157   : > { %4552 = vmatprep.mubr.msk.f32.mxu0 %vm5097_vm7, %v5095_v20  ;;  %4807 = vmatprep.subr.bf16.mxu0 %v5096_v12 }
 0x158   : > { %4594 = vmatprep.mubr.msk.f32.mxu1 %vm5097_vm7, %v5095_v20  ;;  %4825 = vmatprep.subr.bf16.mxu1 %v5096_v12 }
 0x15d   : > { %4553 = vmatmul.mubr.f32.vlgmr.msra.gmra.mrb[4].mxu0 %v5375_v25  ;;  %4595 = vmatmul.mubr.f32.vlgmr.msra.gmra.mrb[4].mxu1 %v5375_v25 }
 0x15e   : > { %4809 = vmatpush3.bf16.msra.mxu0 %v4799_v36  ;;  %4827 = vmatpush3.bf16.msra.mxu1 %v4817_v38 }
 0x15f   : > { %4559 = vmatprep.mubr.msk.f32.mxu0 %vm5097_vm7, %v5095_v20  ;;  %4810 = vmatprep.subr.bf16.mxu0 %v5096_v12 }
 0x160   : > { %4601 = vmatprep.mubr.msk.f32.mxu1 %vm5097_vm7, %v5095_v20  ;;  %4828 = vmatprep.subr.bf16.mxu1 %v5096_v12 }
 0x165   : > { %4560 = vmatmul.mubr.f32.vlgmr.msra.gmra.mrb[4].mxu0 %v5378_v26  ;;  %4602 = vmatmul.mubr.f32.vlgmr.msra.gmra.mrb[4].mxu1 %v5378_v26 }
 0x166   : > { %4812 = vmatpush3.bf16.msra.mxu0 %v4811_v51  ;;  %4830 = vmatpush3.bf16.msra.mxu1 %v4829_v52 }
 0x167   : > { %4566 = vmatprep.mubr.msk.f32.mxu0 %vm5097_vm7, %v5095_v20  ;;  %4813 = vmatprep.subr.bf16.mxu0 %v5096_v12 }
 0x168   : > { %4608 = vmatprep.mubr.msk.f32.mxu1 %vm5097_vm7, %v5095_v20  ;;  %4831 = vmatprep.subr.bf16.mxu1 %v5096_v12 }
 0x16d   : > { %4567 = vmatmul.mubr.msk.f32.vlgmr.msra.gmra.mrb[4].mxu0 %vm197_vm0, %v5371_v23  ;;  %4609 = vmatmul.mubr.msk.f32.vlgmr.msra.gmra.mrb[4].mxu1 %vm197_vm0, %v5371_v23 }
 0x16e   : > { %4815 = vmatpush3.bf16.msra.mxu0 %v4799_v36  ;;  %4833 = vmatpush3.bf16.msra.mxu1 %v4817_v38 }
 0x16f   : > { %4573 = vmatprep.mubr.msk.f32.mxu0 %vm5097_vm7, %v5095_v20  ;;  %4615 = vmatprep.mubr.msk.f32.mxu1 %vm5097_vm7, %v5095_v20 }
 0x170   : > { %v4491_v59 = vpop.f32.mrb[2].mxu0  ;;  %v4533_v60 = vpop.f32.mrb[2].mxu1  ;;  %4834 = vmatprep.subr.bf16.mxu0 %v5096_v12  ;;  %4852 = vmatprep.subr.bf16.mxu1 %v5096_v12 }
 0x171   : > { %v3155_v61 = vand.u32 4294901760, %v4491_v59  ;;  %v3614_v62 = vand.u32 4294901760, %v4533_v60  ;;  %v1712_v63 = vpop.f32.mrb[3].mxu0  ;;  %v2220_v0 = vpop.f32.mrb[3].mxu1 }
 0x172   : > { %v3152_v3 = vand.u32 4294901760, %v1712_v63  ;;  %v3611_v4 = vand.u32 4294901760, %v2220_v0 }
 0x173   : > { %v3237_v5 = vsub.f32 %v4491_v59, %v3155_v61  ;;  %v3696_v6 = vsub.f32 %v4533_v60, %v3614_v62 }
 0x174   : > { %v5430_v7 = vpack.c.bf16 %v3155_v61, %v3152_v3  ;;  %v3230_v8 = vsub.f32 %v1712_v63, %v3152_v3  ;;  %v4853_v9 = vpack.c.bf16 %v3614_v62, %v3611_v4  ;;  %v3689_v10 = vsub.f32 %v2220_v0, %v3611_v4 }
 0x175   : > { %v3238_v11 = vand.u32 4294901760, %v3237_v5  ;;  %v3697_v13 = vand.u32 4294901760, %v3696_v6  ;;  %4574 = vmatmul.mubr.msk.f32.vlgmr.msra.gmra.mrb[4].mxu0 %vm197_vm0, %v5371_v23  ;;  %4616 = vmatmul.mubr.msk.f32.vlgmr.msra.gmra.mrb[4].mxu1 %vm197_vm0, %v5371_v23 }
 0x176   : > { %v3231_v14 = vand.u32 4294901760, %v3230_v8  ;;  %v4841_v15 = vpack.c.bf16 %v3237_v5, %v3230_v8  ;;  %v3690_v18 = vand.u32 4294901760, %v3689_v10  ;;  %v4859_v21 = vpack.c.bf16 %v3696_v6, %v3689_v10  ;;  %4836 = vmatpush3.bf16.msra.mxu0 %v5430_v7  ;;  %4854 = vmatpush3.bf16.msra.mxu1 %v4853_v9 }
 0x177   : > { %v3239_v22 = vsub.f32 %v3237_v5, %v3238_v11  ;;  %v3698_v16 = vsub.f32 %v3696_v6, %v3697_v13  ;;  %4622 = vmatprep.mubr.msk.f32.mxu0 %vm5097_vm7, %v5095_v20  ;;  %4664 = vmatprep.mubr.msk.f32.mxu1 %vm5097_vm7, %v5095_v20 }
 0x178   : > { %v3232_v17 = vsub.f32 %v3230_v8, %v3231_v14  ;;  %v3691_v19 = vsub.f32 %v3689_v10, %v3690_v18  ;;  %4837 = vmatprep.subr.bf16.mxu0 %v5096_v12  ;;  %4855 = vmatprep.subr.bf16.mxu1 %v5096_v12  ;;  %v4847_v24 = vpack.c.bf16 %v3238_v11, %v3231_v14 }
 0x179   : > { %v3240_v27 = vand.u32 4294901760, %v3239_v22  ;;  %v3699_v1 = vand.u32 4294901760, %v3698_v16  ;;  %4623 = vmatmul.mubr.f32.vlgmr.msra.gmra.mrb[6].mxu0 %v5382_v42  ;;  %4665 = vmatmul.mubr.f32.vlgmr.msra.gmra.mrb[6].mxu1 %v5382_v42  ;;  %v4865_v28 = vpack.c.bf16 %v3697_v13, %v3690_v18 }
 0x17a   : > { %v3233_v29 = vand.u32 4294901760, %v3232_v17  ;;  %v3692_v30 = vand.u32 4294901760, %v3691_v19  ;;  %4629 = vmatprep.mubr.msk.f32.mxu0 %vm5097_vm7, %v5095_v20  ;;  %4671 = vmatprep.mubr.msk.f32.mxu1 %vm5097_vm7, %v5095_v20 }
 0x17c   : > { %v4838_v31 = vpack.c.bf16 %v3240_v27, %v3233_v29  ;;  %v4856_v2 = vpack.c.bf16 %v3699_v1, %v3692_v30 }
 0x17e   : > { %4839 = vmatpush3.bf16.msra.mxu0 %v4838_v31  ;;  %4857 = vmatpush3.bf16.msra.mxu1 %v4856_v2 }
 0x17f   : > { %4840 = vmatprep.subr.bf16.mxu0 %v5096_v12  ;;  %4858 = vmatprep.subr.bf16.mxu1 %v5096_v12 }
 0x181   : > { %4630 = vmatmul.mubr.msk.f32.vlgmr.msra.gmra.mrb[6].mxu0 %vm197_vm0, %v5371_v23  ;;  %4672 = vmatmul.mubr.msk.f32.vlgmr.msra.gmra.mrb[6].mxu1 %vm197_vm0, %v5371_v23 }
 0x182   : > { %4842 = vmatpush3.bf16.msra.mxu0 %v4841_v15  ;;  %4860 = vmatpush3.bf16.msra.mxu1 %v4859_v21 }
 0x183   : > { %4636 = vmatprep.mubr.msk.f32.mxu0 %vm5097_vm7, %v5095_v20  ;;  %4843 = vmatprep.subr.bf16.mxu0 %v5096_v12 }
 0x184   : > { %4678 = vmatprep.mubr.msk.f32.mxu1 %vm5097_vm7, %v5095_v20  ;;  %4861 = vmatprep.subr.bf16.mxu1 %v5096_v12 }
 0x189   : > { %4637 = vmatmul.mubr.f32.vlgmr.msra.gmra.mrb[6].mxu0 %v5375_v25  ;;  %4679 = vmatmul.mubr.f32.vlgmr.msra.gmra.mrb[6].mxu1 %v5375_v25 }
 0x18a   : > { %4845 = vmatpush3.bf16.msra.mxu0 %v5430_v7  ;;  %4863 = vmatpush3.bf16.msra.mxu1 %v4853_v9 }
 0x18b   : > { %4643 = vmatprep.mubr.msk.f32.mxu0 %vm5097_vm7, %v5095_v20  ;;  %4846 = vmatprep.subr.bf16.mxu0 %v5096_v12 }
 0x18c   : > { %4685 = vmatprep.mubr.msk.f32.mxu1 %vm5097_vm7, %v5095_v20  ;;  %4864 = vmatprep.subr.bf16.mxu1 %v5096_v12 }
 0x191   : > { %4644 = vmatmul.mubr.f32.vlgmr.msra.gmra.mrb[6].mxu0 %v5378_v26  ;;  %4686 = vmatmul.mubr.f32.vlgmr.msra.gmra.mrb[6].mxu1 %v5378_v26 }
 0x192   : > { %4848 = vmatpush3.bf16.msra.mxu0 %v4847_v24  ;;  %4866 = vmatpush3.bf16.msra.mxu1 %v4865_v28 }
 0x193   : > { %4650 = vmatprep.mubr.msk.f32.mxu0 %vm5097_vm7, %v5095_v20  ;;  %4849 = vmatprep.subr.bf16.mxu0 %v5096_v12 }
 0x194   : > { %4692 = vmatprep.mubr.msk.f32.mxu1 %vm5097_vm7, %v5095_v20  ;;  %4867 = vmatprep.subr.bf16.mxu1 %v5096_v12 }
 0x199   : > { %4651 = vmatmul.mubr.msk.f32.vlgmr.msra.gmra.mrb[6].mxu0 %vm197_vm0, %v5371_v23  ;;  %4693 = vmatmul.mubr.msk.f32.vlgmr.msra.gmra.mrb[6].mxu1 %vm197_vm0, %v5371_v23 }
 0x19a   : > { %4851 = vmatpush3.bf16.msra.mxu0 %v5430_v7  ;;  %4869 = vmatpush3.bf16.msra.mxu1 %v4853_v9 }
 0x19b   : > { %4657 = vmatprep.mubr.msk.f32.mxu0 %vm5097_vm7, %v5095_v20  ;;  %4699 = vmatprep.mubr.msk.f32.mxu1 %vm5097_vm7, %v5095_v20 }
 0x1a1   : > { %4658 = vmatmul.mubr.msk.f32.vlgmr.msra.gmra.mrb[6].mxu0 %vm197_vm0, %v5371_v23  ;;  %4700 = vmatmul.mubr.msk.f32.vlgmr.msra.gmra.mrb[6].mxu1 %vm197_vm0, %v5371_v23 }
 0x248   : > { %v2688_v12 = vpop.f32.mrb[4].mxu0  ;;  %v3147_v25 = vpop.f32.mrb[4].mxu1 }
 0x249   : > { %4070 = vst.msk [vmem:[%s164_s26] sm:$0x3f] %vm4069_vm11, %v2688_v12  ;;  %4071 = vst.msk [vmem:[%s164_s26 + $0x8] sm:$0x3f] %vm4069_vm11, %v3147_v25  ;;  %v4575_v26 = vpop.f32.mrb[5].mxu0  ;;  %v4617_v20 = vpop.f32.mrb[5].mxu1 }
 0x274   : > { %v3606_v32 = vpop.f32.mrb[6].mxu0  ;;  %v4065_v33 = vpop.f32.mrb[6].mxu1 }
 0x275   : > { %4072 = vst.msk [vmem:[%s164_s26 + $0x10] sm:$0x3f] %vm4069_vm11, %v3606_v32  ;;  %4073 = vst.msk [vmem:[%s164_s26 + $0x18] sm:$0x3f] %vm4069_vm11, %v4065_v33  ;;  %v4659_v34 = vpop.f32.mrb[7].mxu0  ;;  %v4701_v23 = vpop.f32.mrb[7].mxu1 }
 0x276 PF: > { %s14_s11 = sadd.s32 1, %s5090_s11   ;;  %s5519_s6 = smov %s5074_s7 }
 0x277   : > { %p11_p9 = scmp.ge.s32.totalorder %s14_s11, 4   ;;  %s5520_s7 = smov %s5078_s8 }
 0x278   : > { %s5521_s8 = smov %s5157_s18  ;;  %s5522_s9 = smov %s5086_s10 }
 0x279   : > { %s5523_s10 = smov %s5525_s13  ;;  %13 = sbr.rel (!%p11_p9) target bundleno = 4 (0x4), region = 64 }
 0x280   :  { %4104 = vsyncpa [#allocation3], 1 }
 0x281   :  { %4106 = vsyncpa [#allocation3 + $0x1], 1 }

</bundles_post_ra>
